<compile_context>
chip_gen: v7x
topology: tpu7x:2x2x1
jax: 0.10.0
libtpu: 0.0.40
codegen_flags: <defaults>
</compile_context>

<pallas_src>
import math

import jax
import jax.numpy as jnp
from jax.experimental import pallas as pl
from jax.experimental.pallas import tpu as pltpu

HID = 32  # hid_sizes=(32, 32)


# ----------------------------- Pallas kernel -------------------------------
def _reward_mlp_kernel(st_ref, at_ref, w1s_ref, w1a_ref, b1_ref,
                       w2_ref, b2_ref, w3_ref, b3_ref, o_ref):
    st = st_ref[...]                                    # (obs_dim, TB) f32
    at = at_ref[...]                                    # (act_dim, TB) f32
    # Layer 1 -- split-W1 matmul fuses the [state, action] concat.
    h1 = jnp.dot(w1s_ref[...], st, preferred_element_type=jnp.float32)
    h1 = h1 + jnp.dot(w1a_ref[...], at, preferred_element_type=jnp.float32)
    h1 = jnp.maximum(h1 + b1_ref[...], 0.0)             # (HID, TB), lane-dense
    # Layer 2
    h2 = jnp.dot(w2_ref[...], h1, preferred_element_type=jnp.float32)
    h2 = jnp.maximum(h2 + b2_ref[...], 0.0)             # (HID, TB)
    # Output layer -> (1, TB): lane-dense, unmasked stores.
    out = jnp.dot(w3_ref[...], h2, preferred_element_type=jnp.float32)
    o_ref[...] = out + b3_ref[0, 0]                     # scalar bias from SMEM


def _mlp_pallas(st, at, w1s, w1a, b1, w2, b2, w3, b3, tb):
    obs_dim, Bp = st.shape
    act_dim = at.shape[0]
    assert Bp % tb == 0 and tb % 128 == 0

    def batch_spec(feat):
        return pl.BlockSpec((feat, tb), lambda i: (0, i))

    def const_spec(r, c):
        return pl.BlockSpec((r, c), lambda i: (0, 0))

    grid_spec = pltpu.PrefetchScalarGridSpec(
        num_scalar_prefetch=0,
        grid=(Bp // tb,),
        in_specs=[
            batch_spec(obs_dim),                       # state^T tile
            batch_spec(act_dim),                       # action^T tile
            const_spec(HID, obs_dim),                  # W1[:, :obs_dim]
            const_spec(HID, act_dim),                  # W1[:, obs_dim:]
            const_spec(HID, 1),                        # b1
            const_spec(HID, HID),                      # W2
            const_spec(HID, 1),                        # b2
            const_spec(1, HID),                        # W3
            pl.BlockSpec(memory_space=pltpu.MemorySpace.SMEM),  # b3 scalar
        ],
        out_specs=pl.BlockSpec((1, tb), lambda i: (0, i)),
    )
    return pl.pallas_call(
        _reward_mlp_kernel,
        out_shape=jax.ShapeDtypeStruct((1, Bp), jnp.float32),
        grid_spec=grid_spec,
        compiler_params=pltpu.CompilerParams(
            dimension_semantics=("parallel",),          # batch axis is parallel
            vmem_limit_bytes=32 * 1024 * 1024,          # safe on v5e/v6e/v7x
        ),
    )(st, at, w1s, w1a, b1, w2, b2, w3, b3)


def _batch_tile(B):
    # Lane-aligned batch tile: big enough to amortize the ~0.35 us/step grid
    # overhead, small enough that double-buffered tiles stay far below the
    # scoped-VMEM default on every generation (v5e/v6e/v7x).
    b128 = ((B + 127) // 128) * 128
    return min(1024, b128)


# ------------------------------ Module port --------------------------------
class BasicRewardNetPallas:
    """JAX/Pallas port of BasicRewardNet (use_state=True, use_action=True)."""

    def __init__(self, obs_shape, act_shape, key):
        self.obs_dim = int(math.prod(obs_shape))
        self.act_dim = int(math.prod(act_shape))
        in_size = self.obs_dim + self.act_dim            # combined_size
        sizes = (in_size, HID, HID, 1)                   # 3 Linear layers

        params = []
        for i in range(len(sizes) - 1):
            fan_in, fan_out = sizes[i], sizes[i + 1]
            key, kw, kb = jax.random.split(key, 3)
            bound = 1.0 / math.sqrt(fan_in)              # PyTorch Linear default init
            # PyTorch layout: weight is (out_features, in_features).
            w = jax.random.uniform(kw, (fan_out, fan_in), jnp.float32, -bound, bound)
            b = jax.random.uniform(kb, (fan_out, 1), jnp.float32, -bound, bound)
            params.append((w, b))
        (w1, b1), (w2, b2), (w3, b3) = params
        # Split W1 along its input axis so the kernel can fuse the concat.
        self.w1s = w1[:, :self.obs_dim]
        self.w1a = w1[:, self.obs_dim:]
        self.w1, self.b1 = w1, b1
        self.w2, self.b2 = w2, b2
        self.w3, self.b3 = w3, b3

    def __call__(self, state, action, next_state, done):
        B = state.shape[0]
        # use_state / use_action: flatten each to (B, feat).
        # use_next_state=False, use_done=False (defaults) -> not part of input.
        # Transposed (feature, batch) layout puts the batch on the 128-lane axis.
        st = state.reshape(B, -1).astype(jnp.float32).T      # (obs_dim, B)
        at = action.reshape(B, -1).astype(jnp.float32).T     # (act_dim, B)

        tb = _batch_tile(B)
        Bp = ((B + tb - 1) // tb) * tb
        if Bp != B:                                          # pad the tail tile
            st = jnp.pad(st, ((0, 0), (0, Bp - B)))
            at = jnp.pad(at, ((0, 0), (0, Bp - B)))

        out = _mlp_pallas(st, at, self.w1s, self.w1a, self.b1,
                          self.w2, self.b2, self.w3, self.b3, tb)   # (1, Bp)
        out = out[0, :B]                                     # squeeze_output=True
        assert out.shape == state.shape[:1]
        return out


# ------------------------------ Reference ----------------------------------
def _reference_forward(net, state, action):
    B = state.shape[0]
    x = jnp.concatenate(
        [state.reshape(B, -1), action.reshape(B, -1)], axis=1).astype(jnp.float32)
    h1 = jnp.maximum(x @ net.w1.T + net.b1[:, 0], 0.0)
    h2 = jnp.maximum(h1 @ net.w2.T + net.b2[:, 0], 0.0)
    return (h2 @ net.w3.T + net.b3[:, 0])[:, 0]


if __name__ == "__main__":
    key = jax.random.PRNGKey(0)
    k_param, k_state, k_action, k_next, k_done, k_big = jax.random.split(key, 6)

    batch = 2
    obs_shape = (4, 4)     # e.g. a small Box observation space
    act_shape = (4,)       # e.g. a small Box action space

    net = BasicRewardNetPallas(obs_shape, act_shape, k_param)

    state = jax.random.normal(k_state, (batch,) + obs_shape, jnp.float32)
    action = jax.random.normal(k_action, (batch,) + act_shape, jnp.float32)
    next_state = jax.random.normal(k_next, (batch,) + obs_shape, jnp.float32)
    done = (jax.random.uniform(k_done, (batch,)) > 0.5).astype(jnp.float32)

    rew = net(state, action, next_state, done)
    jax.block_until_ready(rew)

    ref = _reference_forward(net, state, action)
    assert rew.shape == (batch,)
    assert jnp.allclose(rew, ref, atol=1e-5, rtol=1e-5), (rew, ref)

    # Second check: multi-step grid + ragged batch (B not a multiple of the tile).
    big_batch = 2500
    ks, ka = jax.random.split(k_big)
    big_state = jax.random.normal(ks, (big_batch,) + obs_shape, jnp.float32)
    big_action = jax.random.normal(ka, (big_batch,) + act_shape, jnp.float32)
    big_done = jnp.zeros((big_batch,), jnp.float32)
    big_rew = net(big_state, big_action, big_state, big_done)
    jax.block_until_ready(big_rew)
    big_ref = _reference_forward(net, big_state, big_action)
    assert big_rew.shape == (big_batch,)
    assert jnp.allclose(big_rew, big_ref, atol=1e-4, rtol=1e-4), "large-batch mismatch"

    print("KERNEL_OK")
</pallas_src>

<mosaic_0001>
module attributes {stable_mosaic.version = 11 : i64} {
  func.func @_reward_mlp_kernel(%arg0: i32, %arg1: memref<16x128xf32, #tpu.memory_space<vmem>>, %arg2: memref<4x128xf32, #tpu.memory_space<vmem>>, %arg3: memref<32x16xf32, #tpu.memory_space<vmem>>, %arg4: memref<32x4xf32, #tpu.memory_space<vmem>>, %arg5: memref<32x1xf32, #tpu.memory_space<vmem>>, %arg6: memref<32x32xf32, #tpu.memory_space<vmem>>, %arg7: memref<32x1xf32, #tpu.memory_space<vmem>>, %arg8: memref<1x32xf32, #tpu.memory_space<vmem>>, %arg9: memref<1x1xf32, #tpu.memory_space<smem>>, %arg10: memref<1x128xf32, #tpu.memory_space<vmem>>) attributes {dimension_semantics = [#tpu.dimension_semantics<parallel>], iteration_bounds = array<i64: 1>, scalar_prefetch = 0 : i64, scratch_operands = 0 : i64, tpu.core_type = #tpu.core_type<tc>, window_params = [{transform_indices = @transform_0, window_bounds = array<i64: 16, 128>}, {transform_indices = @transform_1, window_bounds = array<i64: 4, 128>}, {pipeline_mode = #tpu.pipeline_mode<synchronous>, transform_indices = @transform_2, window_bounds = array<i64: 32, 16>}, {pipeline_mode = #tpu.pipeline_mode<synchronous>, transform_indices = @transform_3, window_bounds = array<i64: 32, 4>}, {pipeline_mode = #tpu.pipeline_mode<synchronous>, transform_indices = @transform_4, window_bounds = array<i64: 32, 1>}, {pipeline_mode = #tpu.pipeline_mode<synchronous>, transform_indices = @transform_5, window_bounds = array<i64: 32, 32>}, {pipeline_mode = #tpu.pipeline_mode<synchronous>, transform_indices = @transform_6, window_bounds = array<i64: 32, 1>}, {pipeline_mode = #tpu.pipeline_mode<synchronous>, transform_indices = @transform_7, window_bounds = array<i64: 1, 32>}, {transform_indices = @transform_8, window_bounds = array<i64: 1, 1>}, {transform_indices = @transform_9, window_bounds = array<i64: 1, 128>}]} {
    %c0 = arith.constant 0 : index
    %c0_0 = arith.constant 0 : index
    %0 = vector.load %arg1[%c0, %c0_0] : memref<16x128xf32, #tpu.memory_space<vmem>>, vector<16x128xf32>
    %c0_1 = arith.constant 0 : index
    %c0_2 = arith.constant 0 : index
    %1 = vector.load %arg2[%c0_1, %c0_2] : memref<4x128xf32, #tpu.memory_space<vmem>>, vector<4x128xf32>
    %c0_3 = arith.constant 0 : index
    %c0_4 = arith.constant 0 : index
    %2 = vector.load %arg3[%c0_3, %c0_4] : memref<32x16xf32, #tpu.memory_space<vmem>>, vector<32x16xf32>
    %cst = arith.constant dense<0.000000e+00> : vector<32x128xf32>
    %3 = tpu.matmul %2, %0, %cst {dimension_numbers = #tpu.dot_dimension_numbers<[1], [0], [0], [1], [0, 0, 1, 1], [], []>} : vector<32x16xf32>, vector<16x128xf32>, vector<32x128xf32> -> vector<32x128xf32>
    %c0_5 = arith.constant 0 : index
    %c0_6 = arith.constant 0 : index
    %4 = vector.load %arg4[%c0_5, %c0_6] : memref<32x4xf32, #tpu.memory_space<vmem>>, vector<32x4xf32>
    %cst_7 = arith.constant dense<0.000000e+00> : vector<32x128xf32>
    %5 = tpu.matmul %4, %1, %cst_7 {dimension_numbers = #tpu.dot_dimension_numbers<[1], [0], [0], [1], [0, 0, 1, 1], [], []>} : vector<32x4xf32>, vector<4x128xf32>, vector<32x128xf32> -> vector<32x128xf32>
    %6 = arith.addf %3, %5 : vector<32x128xf32>
    %c0_8 = arith.constant 0 : index
    %c0_9 = arith.constant 0 : index
    %7 = vector.load %arg5[%c0_8, %c0_9] : memref<32x1xf32, #tpu.memory_space<vmem>>, vector<32x1xf32>
    %8 = vector.broadcast %7 : vector<32x1xf32> to vector<32x128xf32>
    %9 = arith.addf %6, %8 : vector<32x128xf32>
    %cst_10 = arith.constant 0.000000e+00 : f32
    %10 = vector.broadcast %cst_10 : f32 to vector<32x128xf32>
    %11 = arith.maximumf %9, %10 : vector<32x128xf32>
    %c0_11 = arith.constant 0 : index
    %c0_12 = arith.constant 0 : index
    %12 = vector.load %arg6[%c0_11, %c0_12] : memref<32x32xf32, #tpu.memory_space<vmem>>, vector<32x32xf32>
    %cst_13 = arith.constant dense<0.000000e+00> : vector<32x128xf32>
    %13 = tpu.matmul %12, %11, %cst_13 {dimension_numbers = #tpu.dot_dimension_numbers<[1], [0], [0], [1], [0, 0, 1, 1], [], []>} : vector<32x32xf32>, vector<32x128xf32>, vector<32x128xf32> -> vector<32x128xf32>
    %c0_14 = arith.constant 0 : index
    %c0_15 = arith.constant 0 : index
    %14 = vector.load %arg7[%c0_14, %c0_15] : memref<32x1xf32, #tpu.memory_space<vmem>>, vector<32x1xf32>
    %15 = vector.broadcast %14 : vector<32x1xf32> to vector<32x128xf32>
    %16 = arith.addf %13, %15 : vector<32x128xf32>
    %cst_16 = arith.constant 0.000000e+00 : f32
    %17 = vector.broadcast %cst_16 : f32 to vector<32x128xf32>
    %18 = arith.maximumf %16, %17 : vector<32x128xf32>
    %c0_17 = arith.constant 0 : index
    %c0_18 = arith.constant 0 : index
    %19 = vector.load %arg8[%c0_17, %c0_18] : memref<1x32xf32, #tpu.memory_space<vmem>>, vector<1x32xf32>
    %cst_19 = arith.constant dense<0.000000e+00> : vector<1x128xf32>
    %20 = tpu.matmul %19, %18, %cst_19 {dimension_numbers = #tpu.dot_dimension_numbers<[1], [0], [0], [1], [0, 0, 1, 1], [], []>} : vector<1x32xf32>, vector<32x128xf32>, vector<1x128xf32> -> vector<1x128xf32>
    %c0_20 = arith.constant 0 : index
    %c0_21 = arith.constant 0 : index
    %21 = memref.load %arg9[%c0_20, %c0_21] : memref<1x1xf32, #tpu.memory_space<smem>>
    %22 = vector.broadcast %21 : f32 to vector<1x128xf32>
    %23 = arith.addf %20, %22 : vector<1x128xf32>
    %c0_22 = arith.constant 0 : index
    %c0_23 = arith.constant 0 : index
    %24 = vector.load %arg10[%c0_22, %c0_23] : memref<1x128xf32, #tpu.memory_space<vmem>>, vector<1x128xf32>
    tpu.vector_store %arg10[%c0_22, %c0_23], %23 {strides = array<i32>} : memref<1x128xf32, #tpu.memory_space<vmem>>, vector<1x128xf32>,
    return
  }
  func.func @transform_0(%arg0: i32) -> (i32, i32) {
    %c0_i32 = arith.constant 0 : i32
    %c0_i32_0 = arith.constant 0 : i32
    return %c0_i32, %arg0 : i32, i32
  }
  func.func @transform_1(%arg0: i32) -> (i32, i32) {
    %c0_i32 = arith.constant 0 : i32
    %c0_i32_0 = arith.constant 0 : i32
    return %c0_i32, %arg0 : i32, i32
  }
  func.func @transform_2(%arg0: i32) -> (i32, i32) {
    %c0_i32 = arith.constant 0 : i32
    %c0_i32_0 = arith.constant 0 : i32
    %c0_i32_1 = arith.constant 0 : i32
    return %c0_i32, %c0_i32_0 : i32, i32
  }
  func.func @transform_3(%arg0: i32) -> (i32, i32) {
    %c0_i32 = arith.constant 0 : i32
    %c0_i32_0 = arith.constant 0 : i32
    %c0_i32_1 = arith.constant 0 : i32
    return %c0_i32, %c0_i32_0 : i32, i32
  }
  func.func @transform_4(%arg0: i32) -> (i32, i32) {
    %c0_i32 = arith.constant 0 : i32
    %c0_i32_0 = arith.constant 0 : i32
    %c0_i32_1 = arith.constant 0 : i32
    return %c0_i32, %c0_i32_0 : i32, i32
  }
  func.func @transform_5(%arg0: i32) -> (i32, i32) {
    %c0_i32 = arith.constant 0 : i32
    %c0_i32_0 = arith.constant 0 : i32
    %c0_i32_1 = arith.constant 0 : i32
    return %c0_i32, %c0_i32_0 : i32, i32
  }
  func.func @transform_6(%arg0: i32) -> (i32, i32) {
    %c0_i32 = arith.constant 0 : i32
    %c0_i32_0 = arith.constant 0 : i32
    %c0_i32_1 = arith.constant 0 : i32
    return %c0_i32, %c0_i32_0 : i32, i32
  }
  func.func @transform_7(%arg0: i32) -> (i32, i32) {
    %c0_i32 = arith.constant 0 : i32
    %c0_i32_0 = arith.constant 0 : i32
    %c0_i32_1 = arith.constant 0 : i32
    return %c0_i32, %c0_i32_0 : i32, i32
  }
  func.func @transform_8(%arg0: i32) -> (i32, i32) {
    %c0_i32 = arith.constant 0 : i32
    %c0_i32_0 = arith.constant 0 : i32
    %c0_i32_1 = arith.constant 0 : i32
    return %c0_i32, %c0_i32_0 : i32, i32
  }
  func.func @transform_9(%arg0: i32) -> (i32, i32) {
    %c0_i32 = arith.constant 0 : i32
    %c0_i32_0 = arith.constant 0 : i32
    return %c0_i32, %arg0 : i32, i32
  }
}

</mosaic_0001>

<bundles_post_ra>
// kernel: tpu_custom_call.1
= control target key start
LH: loop header
LB: loop body
LE: loop exit
PB: predicated region body
PF: predicated region fallthrough
CT: control target
= control target key end

     0   :  { %vm58_vm0 = vcmask 1043456   ;;  %vm45_vm1 = vcmask 31744   ;;  %v632_v7 = vmov 0   ;;  %vm147_vm2 = vcmask 130048   ;;  %s787_s0 = inlined_call_operand.vmem [shape: f32[16,128], index: 0, kind: input, shape index: {}]   ;;  %s788_s1 = inlined_call_operand.vmem [shape: f32[4,128], index: 1, kind: input, shape index: {}]   ;;  %s789_s2 = inlined_call_operand.vmem [shape: f32[32,16], index: 2, kind: input, shape index: {}]   ;;  %s790_s3 = inlined_call_operand.vmem [shape: f32[32,4], index: 3, kind: input, shape index: {}]   ;;  %s791_s4 = inlined_call_operand.vmem [shape: f32[32,1], index: 4, kind: input, shape index: {}]   ;;  %s792_s5 = inlined_call_operand.vmem [shape: f32[32,32], index: 5, kind: input, shape index: {}]   ;;  %s793_s6 = inlined_call_operand.vmem [shape: f32[32,1], index: 6, kind: input, shape index: {}]   ;;  %s794_s7 = inlined_call_operand.vmem [shape: f32[1,32], index: 7, kind: input, shape index: {}]   ;;  %s795_s8 = inlined_call_operand.<no memory space> [shape: f32[1,1], index: 8, kind: input, shape index: {}]   ;;  %s796_s9 = inlined_call_operand.hbm [shape: f32[1,128], index: 9, kind: output, shape index: {}]  }
   0x1   :  { %v36_v0 = vld [vmem:[%s788_s1] sm:$0xf]  ;;  %v42_v2 = vld [vmem:[%s790_s3 + $0x8] sm:$0xff]  ;;  %v43_v5 = vld [vmem:[%s790_s3 + $0x10] sm:$0xff]  ;;  %606 = vset.pattern.permute.xlu0 %v632_v7  ;;  %607 = vset.pattern.permute.xlu1 %v632_v7 }
   0x2   :  { %v41_v1 = vld [vmem:[%s790_s3] sm:$0xff]  ;;  %536 = vmatprep.subr.msk.mxu0 %vm58_vm0, %v36_v0  ;;  %v35_v4 = vld [vmem:[%s787_s0 + $0x8] sm:$0xff]  ;;  %v44_v9 = vld [vmem:[%s790_s3 + $0x18] sm:$0xff] }
   0x3   :  { %538 = vmatprep.mubr.msk.f32.mxu0 %vm45_vm1, %v41_v1  ;;  %v34_v3 = vld [vmem:[%s787_s0] sm:$0xff]  ;;  %537 = vmatpush3.msk.msra.mxu0 %vm58_vm0, %v36_v0  ;;  %v247_v10 = vld [vmem:[%s791_s4 + $0x10] sm:$0xff]  ;;  %v246_v12 = vld [vmem:[%s791_s4 + $0x8] sm:$0xff] }
   0x4   :  { %v579_v6 = vpack.c.bf16 %v35_v4, %v34_v3  ;;  %539 = vmatmul.mubr.msk.f32.vlgmr.msra.gmra.mrb[0].mxu0 %vm45_vm1, %v42_v2  ;;  %v245_v8 = vld [vmem:[%s791_s4] sm:$0xff]  ;;  %261 = vperm.xlu1 %607, %v247_v10  }
   0x5   :  { %541 = vmatprep.mubr.msk.f32.mxu0 %vm45_vm1, %v43_v5  ;;  %v37_v11 = vld [vmem:[%s789_s2] sm:$0xff]  ;;  %251 = vperm.xlu0 %606, %v245_v8  }
   0x6   :  { %580 = vmatprep.subr.bf16.mxu0 %v579_v6 }
   0x7   :  { %582 = vmatpush3.bf16.msra.mxu0 %v579_v6 }
   0x8   :  { %15 = vsyncpa [#allocation4], 0  ;;  %542 = vmatmul.mubr.msk.f32.gmra.mrb[2].mxu0 %vm45_vm1, %v44_v9  ;;  %v248_v13 = vld [vmem:[%s791_s4 + $0x18] sm:$0xff]  ;;  %v38_v14 = vld [vmem:[%s789_s2 + $0x8] sm:$0xff]  ;;  %vm305_vm3 = vcmask 261120   ;;  %v633_v43 = vmov 0.0|0.0   ;;  %v409_v0 = vstv %s795_s8 }
   0x9   :  { %548 = vmatprep.mubr.msk.f32.mxu0 %vm147_vm2, %v37_v11  ;;  %v39_v15 = vld [vmem:[%s789_s2 + $0x10] sm:$0xff]  ;;  %256 = vperm.xlu0 %606, %v246_v12   ;;  %v281_v16 = vld [vmem:[%s793_s6] sm:$0xff]  ;;  %v282_v17 = vld [vmem:[%s793_s6 + $0x8] sm:$0xff]  ;;  %vm634_vm4 = vmmov 0   ;;  %v635_v44 = vmov 0.0   ;;  %s636_s3 = smov [#allocation3]  }
   0xa   :  { %266 = vperm.xlu1 %607, %v248_v13   ;;  %v40_v18 = vld [vmem:[%s789_s2 + $0x18] sm:$0xff]  ;;  %v283_v19 = vld [vmem:[%s793_s6 + $0x10] sm:$0xff]  ;;  %v277_v21 = vld [vmem:[%s792_s5] sm:$0xff]  ;;  %s490_s29 = sshll.u32 %s636_s3, 4  ;;  %s491_s29 = int_to_ptr.vmem [resolvable:$true] %s490_s29 }
   0xb   :  { %v284_v20 = vld [vmem:[%s793_s6 + $0x18] sm:$0xff]  ;;  %562 = vmatprep.mubr.msk.f32.mxu1 %vm305_vm3, %v277_v21  ;;  %v278_v40 = vld [vmem:[%s792_s5 + $0x8] sm:$0xff]  ;;  %v279_v41 = vld [vmem:[%s792_s5 + $0x10] sm:$0xff]  ;;  %s608_s30 = scalar_lea.vmem %s491_s29, 16  ;;  %s612_s10 = scalar_lea.vmem %s491_s29, 32 }
   0xc   :  { %549 = vmatmul.mubr.msk.f32.vlgmr.msra.gmra.mrb[0].mxu0 %vm147_vm2, %v38_v14  ;;  %v280_v42 = vld [vmem:[%s792_s5 + $0x18] sm:$0xff]  ;;  %v407_v63 = vld [vmem:[%s794_s7] sm:$0x1]  ;;  %p609_p0 = scmp.ne.s32.totalorder %s491_s29, %s608_s30  ;;  %p613_p1 = scmp.lt.s32.totalorder %s491_s29, %s491_s29 }
   0xd   :  { %551 = vmatprep.mubr.msk.f32.mxu0 %vm147_vm2, %v39_v15  ;;  %287 = vperm.xlu0 %606, %v281_v16   ;;  %p614_p2 = scmp.lt.s32.totalorder %s612_s10, %s608_s30 }
   0xe   :  { %292 = vperm.xlu1 %607, %v282_v17  }
   0xf   :  { %p615_p3 = por %p614_p2, %p613_p1 }
  0x10   :  { %552 = vmatmul.mubr.msk.f32.gmra.mrb[2].mxu0 %vm147_vm2, %v40_v18 }
  0x11   :  { %297 = vperm.xlu0 %606, %v283_v19   ;;  %p616_p4 = pnand %p615_p3, %p609_p0 }
  0x12   :  { %302 = vperm.xlu1 %607, %v284_v20  }
  0x83   :  { %v262_v23 = vpop.permute.xlu1 %261 }
  0x84   :  { %v252_v22 = vpop.permute.xlu0 %251 }
  0x88   :  { %v257_v24 = vpop.permute.xlu0 %256 }
  0x89   :  { %v267_v30 = vpop.permute.xlu1 %266 }
  0x8c   :  { %v288_v46 = vpop.permute.xlu0 %287 }
  0x8d   :  { %v293_v45 = vpop.permute.xlu1 %292 }
  0x90   :  { %v298_v55 = vpop.permute.xlu0 %297 }
  0x91   :  { %v303_v52 = vpop.permute.xlu1 %302 }
  0xdf   :  { %v550_v25 = vpop.f32.mrb[0].mxu0 }
  0xe0   :  { %v270_v26 = vadd.f32 %v550_v25, %v257_v24  ;;  %v226_v27 = vpop.f32.mrb[1].mxu0 }
  0xe1   :  { %v269_v28 = vadd.f32 %v252_v22, %v226_v27 }
  0xe2   :  { %v274_v29 = vmax.f32 %v270_v26, 0.0 }
  0xe3   :  { %v273_v31 = vmax.f32 %v269_v28, 0.0  ;;  %v553_v32 = vpop.f32.mrb[2].mxu0 }
  0xe4   :  { %v272_v33 = vadd.f32 %v553_v32, %v267_v30  ;;  %v236_v34 = vpop.f32.mrb[3].mxu0 }
  0xe5   :  { %v271_v35 = vadd.f32 %v262_v23, %v236_v34  ;;  %v583_v36 = vpack.c.bf16 %v274_v29, %v273_v31 }
  0xe6   :  { %v276_v37 = vmax.f32 %v272_v33, 0.0 }
  0xe7   :  { %v275_v38 = vmax.f32 %v271_v35, 0.0  ;;  %584 = vmatprep.subr.bf16.mxu1 %v583_v36 }
  0xe8   :  { %586 = vmatpush3.bf16.msra.mxu1 %v583_v36 }
  0xe9   :  { %v587_v39 = vpack.c.bf16 %v276_v37, %v275_v38 }
  0xeb   :  { %588 = vmatprep.subr.bf16.mxu1 %v587_v39 }
  0xec   :  { %590 = vmatpush3.bf16.msra.mxu1 %v587_v39 }
  0xed   :  { %591 = vmatprep.subr.bf16.mxu1 %v633_v43 }
  0xef   :  { %563 = vmatmul.mubr.msk.f32.vlgmr.msra.gmra.mrb[0].mxu1 %vm305_vm3, %v278_v40 }
  0xf0   :  { %565 = vmatprep.mubr.msk.f32.mxu1 %vm305_vm3, %v279_v41 }
  0xf3   :  { %566 = vmatmul.mubr.msk.f32.gmra.mrb[2].mxu1 %vm305_vm3, %v280_v42 }
  0xf4   :  { %576 = vmatprep.mubr.msk.f32.mxu1 %vm634_vm4, %v635_v44 }
 0x1c2   :  { %v564_v47 = vpop.f32.mrb[0].mxu1 }
 0x1c3   :  { %v390_v48 = vadd.f32 %v564_v47, %v293_v45  ;;  %v384_v49 = vpop.f32.mrb[1].mxu1 }
 0x1c4   :  { %v385_v50 = vadd.f32 %v384_v49, %v288_v46 }
 0x1c5   :  { %v404_v51 = vmax.f32 %v390_v48, 0.0 }
 0x1c6   :  { %v403_v53 = vmax.f32 %v385_v50, 0.0  ;;  %v567_v54 = vpop.f32.mrb[2].mxu1 }
 0x1c7   :  { %v400_v56 = vadd.f32 %v567_v54, %v303_v52  ;;  %v394_v57 = vpop.f32.mrb[3].mxu1 }
 0x1c8   :  { %v592_v58 = vpack.c.bf16 %v404_v51, %v403_v53  ;;  %v395_v59 = vadd.f32 %v394_v57, %v298_v55 }
 0x1c9   :  { %v406_v60 = vmax.f32 %v400_v56, 0.0 }
 0x1ca   :  { %v405_v61 = vmax.f32 %v395_v59, 0.0  ;;  %593 = vmatpush3.bf16.msra.mxu1 %v592_v58 }
 0x1cb   :  { %594 = vmatprep.subr.bf16.mxu1 %v633_v43 }
 0x1cc   :  { %v595_v62 = vpack.c.bf16 %v406_v60, %v405_v61 }
 0x1ce   :  { %596 = vmatpush3.bf16.msra.mxu1 %v595_v62 }
 0x1d1   :  { %577 = vmatmul.mubr.msk.f32.vlgmr.msra.gmra.mrb[4].mxu1 %vm305_vm3, %v407_v63 }
 0x2a4   :  { %v479_v1 = vpop.f32.mrb[4].mxu1 }
 0x2a5   :  { %v480_v2 = vadd.f32 %v479_v1, %v409_v0  ;;  %v578_v3 = vpop.f32.mrb[5].mxu1 }
 0x2a7   :  { %483 = vst [vmem:[#allocation3] sm:$0x1] %v480_v2 }
 0x2a8   :  { %619 = shalt.err (!%p616_p4)
}
 0x2a9   :  { %s620_s12 = scalar_lea.hbm %s796_s9, 16 }
 0x2aa   :  { %p621_p5 = scmp.ne.s32.totalorder %s796_s9, %s620_s12  ;;  %p624_p6 = scmp.lt.u32.totalorder %s620_s12, %s796_s9 }
 0x2ac   :  { %p626_p7 = pnand %p624_p6, %p621_p5 }
 0x2ae   :  { %629 = shalt.err (!%p626_p7)
}
 0x2af   :  { %493 = dma.vmem_to_hbm [thread:$0]  %s491_s29, 16, %s796_s9, [#allocation4]  }
 0x2b0   :  { %630 = dma.done.wait [#allocation4], 16  }
 0x2b1   :  { %631 = vsyncadd [#allocation4], 4294967280 }
 0x2b2   :  { %497 = vsyncpa [#allocation4], 1 }

</bundles_post_ra>
